<compile_context>
chip_gen: v7x
topology: tpu7x:2x2x1
jax: 0.10.0
libtpu: 0.0.40
codegen_flags: <defaults>
</compile_context>

<pallas_src>
import functools

import jax
import jax.numpy as jnp
from jax.experimental import pallas as pl
from jax.experimental.pallas import tpu as pltpu


def discriminator_kernel(x_ref, w1_ref, b1_ref, w2_ref, b2_ref, wq_ref, bq_ref,
                         o_ref, *, cast_bf16=False):
    mm_dtype = jnp.bfloat16 if cast_bf16 else jnp.float32
    x = x_ref[...].astype(mm_dtype)                             # [TB, n_states]
    h1 = jnp.dot(x, w1_ref[...].astype(mm_dtype),
                 preferred_element_type=jnp.float32) + b1_ref[...]
    h1 = jnp.maximum(h1, 0.0)                                   # ReLU (f32)
    h2 = jnp.dot(h1.astype(mm_dtype), w2_ref[...].astype(mm_dtype),
                 preferred_element_type=jnp.float32) + b2_ref[...]
    h2 = jnp.maximum(h2, 0.0)                                   # ReLU (f32)
    logits = jnp.dot(h2.astype(mm_dtype), wq_ref[...].astype(mm_dtype),
                     preferred_element_type=jnp.float32) + bq_ref[...]
    o_ref[...] = logits.astype(o_ref.dtype)                     # [TB, n_out_pad]


def discriminator_forward(states, params, *, block_b=None, cast_bf16=False):
    """states: [B, n_states] f32. params: dict(w1,b1,w2,b2,wq,bq), weights
    stored [in, out], biases [1, out]. Returns logits [B, n_skills] f32."""
    w1, b1 = params["w1"], params["b1"]
    w2, b2 = params["w2"], params["b2"]
    wq, bq = params["wq"], params["bq"]

    B, n_states = states.shape
    n_hidden = w1.shape[1]
    n_skills = wq.shape[1]

    # Lane-dense output: pad the final projection to a multiple of 128 lanes
    # (the tiny zero-padded columns cost nothing; stores become unmasked vst).
    LANES = 128
    n_out = max(LANES, ((n_skills + LANES - 1) // LANES) * LANES)
    if n_out != n_skills:
        wq_p = jnp.pad(wq, ((0, 0), (0, n_out - n_skills)))
        bq_p = jnp.pad(bq, ((0, 0), (0, n_out - n_skills)))
    else:
        wq_p, bq_p = wq, bq

    # Batch tile: default to two balanced grid steps (v7x megacore), tile a
    # multiple of 8 sublanes, capped at 2048 rows for very large B.
    if block_b is None:
        TB = ((pl.cdiv(B, 2) + 7) // 8) * 8
        TB = max(8, min(2048, TB))
    else:
        TB = max(8, ((min(block_b, B) + 7) // 8) * 8)
    grid = (pl.cdiv(B, TB),)                 # tail block may be partial (OK)

    def resident(shape):
        # Constant block index -> loaded once, VMEM-resident across grid steps.
        return pl.BlockSpec(shape, lambda i: (0,) * len(shape))

    flops = 2 * B * (n_states * n_hidden + n_hidden * n_hidden
                     + n_hidden * n_skills)
    bytes_accessed = 4 * (states.size + w1.size + b1.size + w2.size + b2.size
                          + wq_p.size + bq_p.size + B * n_out)

    kern = functools.partial(discriminator_kernel, cast_bf16=cast_bf16)

    out = pl.pallas_call(
        kern,
        out_shape=jax.ShapeDtypeStruct((B, n_out), jnp.float32),
        grid=grid,
        in_specs=[
            pl.BlockSpec((TB, n_states), lambda i: (i, 0)),     # streamed input
            resident(w1.shape), resident(b1.shape),
            resident(w2.shape), resident(b2.shape),
            resident(wq_p.shape), resident(bq_p.shape),
        ],
        out_specs=pl.BlockSpec((TB, n_out), lambda i: (i, 0)),
        compiler_params=pltpu.CompilerParams(
            dimension_semantics=("parallel",),                  # 2 TCs on v7x
            vmem_limit_bytes=32 * 1024 * 1024),
        cost_estimate=pl.CostEstimate(flops=flops, transcendentals=0,
                                      bytes_accessed=bytes_accessed),
    )(states, w1, b1, w2, b2, wq_p, bq_p)

    return out[:, :n_skills]


def init_params(key, n_states, n_skills, n_hidden):
    """Deterministic init mirroring the PyTorch module:
       hidden1/hidden2: kaiming_normal_ weights, zero bias;
       q: xavier_uniform_ weight, default nn.Linear bias U(+-1/sqrt(fan_in))."""
    ks = jax.random.split(key, 4)

    def he_normal(k, fan_in, fan_out):
        std = jnp.sqrt(2.0 / jnp.float32(fan_in))
        # stored as [in, out] (transpose of torch's [out, in])
        return std * jax.random.normal(k, (fan_in, fan_out), jnp.float32)

    w1 = he_normal(ks[0], n_states, n_hidden)
    b1 = jnp.zeros((1, n_hidden), jnp.float32)
    w2 = he_normal(ks[1], n_hidden, n_hidden)
    b2 = jnp.zeros((1, n_hidden), jnp.float32)

    xav = jnp.sqrt(6.0 / jnp.float32(n_hidden + n_skills))
    wq = jax.random.uniform(ks[2], (n_hidden, n_skills), jnp.float32, -xav, xav)
    bb = 1.0 / jnp.sqrt(jnp.float32(n_hidden))
    bq = jax.random.uniform(ks[3], (1, n_skills), jnp.float32, -bb, bb)

    return {"w1": w1, "b1": b1, "w2": w2, "b2": b2, "wq": wq, "bq": bq}


def reference_forward(states, p):
    h1 = jnp.maximum(states @ p["w1"] + p["b1"], 0.0)
    h2 = jnp.maximum(h1 @ p["w2"] + p["b2"], 0.0)
    return h2 @ p["wq"] + p["bq"]


if __name__ == "__main__":
    key = jax.random.PRNGKey(0)
    k_param, k_x = jax.random.split(key)

    batch = 260            # not a multiple of the tile -> exercises partial tail block
    n_states = 16
    n_skills = 8
    n_hidden = 256         # module default; matches v6e/v7x 256-wide MXU tile

    params = init_params(k_param, n_states, n_skills, n_hidden)
    states = jax.random.normal(k_x, (batch, n_states), jnp.float32)

    out = discriminator_forward(states, params)
    out = jax.block_until_ready(out)

    ref = reference_forward(states, params)
    assert out.shape == (batch, n_skills), out.shape
    assert jnp.allclose(out, ref, atol=1e-3, rtol=1e-3), "mismatch vs reference"

    print("KERNEL_OK")
</pallas_src>

<mosaic_0001>
module attributes {stable_mosaic.version = 11 : i64} {
  func.func @discriminator_kernel(%arg0: i32, %arg1: memref<136x16xf32, #tpu.memory_space<vmem>>, %arg2: memref<16x256xf32, #tpu.memory_space<vmem>>, %arg3: memref<1x256xf32, #tpu.memory_space<vmem>>, %arg4: memref<256x256xf32, #tpu.memory_space<vmem>>, %arg5: memref<1x256xf32, #tpu.memory_space<vmem>>, %arg6: memref<256x128xf32, #tpu.memory_space<vmem>>, %arg7: memref<1x128xf32, #tpu.memory_space<vmem>>, %arg8: memref<136x128xf32, #tpu.memory_space<vmem>>) attributes {dimension_semantics = [#tpu.dimension_semantics<parallel>], iteration_bounds = array<i64: 2>, scalar_prefetch = 0 : i64, scratch_operands = 0 : i64, tpu.core_type = #tpu.core_type<tc>, window_params = [{transform_indices = @transform_0, window_bounds = array<i64: 136, 16>}, {pipeline_mode = #tpu.pipeline_mode<synchronous>, transform_indices = @transform_1, window_bounds = array<i64: 16, 256>}, {pipeline_mode = #tpu.pipeline_mode<synchronous>, transform_indices = @transform_2, window_bounds = array<i64: 1, 256>}, {pipeline_mode = #tpu.pipeline_mode<synchronous>, transform_indices = @transform_3, window_bounds = array<i64: 256, 256>}, {pipeline_mode = #tpu.pipeline_mode<synchronous>, transform_indices = @transform_4, window_bounds = array<i64: 1, 256>}, {pipeline_mode = #tpu.pipeline_mode<synchronous>, transform_indices = @transform_5, window_bounds = array<i64: 256, 128>}, {pipeline_mode = #tpu.pipeline_mode<synchronous>, transform_indices = @transform_6, window_bounds = array<i64: 1, 128>}, {transform_indices = @transform_7, window_bounds = array<i64: 136, 128>}]} {
    %c0 = arith.constant 0 : index
    %c0_0 = arith.constant 0 : index
    %0 = vector.load %arg1[%c0, %c0_0] : memref<136x16xf32, #tpu.memory_space<vmem>>, vector<136x16xf32>
    %c0_1 = arith.constant 0 : index
    %c0_2 = arith.constant 0 : index
    %1 = vector.load %arg2[%c0_1, %c0_2] : memref<16x256xf32, #tpu.memory_space<vmem>>, vector<16x256xf32>
    %cst = arith.constant dense<0.000000e+00> : vector<136x256xf32>
    %2 = tpu.matmul %0, %1, %cst {dimension_numbers = #tpu.dot_dimension_numbers<[1], [0], [0], [1], [0, 0, 1, 1], [], []>} : vector<136x16xf32>, vector<16x256xf32>, vector<136x256xf32> -> vector<136x256xf32>
    %c0_3 = arith.constant 0 : index
    %c0_4 = arith.constant 0 : index
    %3 = vector.load %arg3[%c0_3, %c0_4] : memref<1x256xf32, #tpu.memory_space<vmem>>, vector<1x256xf32>
    %4 = vector.broadcast %3 : vector<1x256xf32> to vector<136x256xf32>
    %5 = arith.addf %2, %4 : vector<136x256xf32>
    %cst_5 = arith.constant 0.000000e+00 : f32
    %6 = vector.broadcast %cst_5 : f32 to vector<136x256xf32>
    %7 = arith.maximumf %5, %6 : vector<136x256xf32>
    %c0_6 = arith.constant 0 : index
    %c0_7 = arith.constant 0 : index
    %8 = vector.load %arg4[%c0_6, %c0_7] : memref<256x256xf32, #tpu.memory_space<vmem>>, vector<256x256xf32>
    %cst_8 = arith.constant dense<0.000000e+00> : vector<136x256xf32>
    %9 = tpu.matmul %7, %8, %cst_8 {dimension_numbers = #tpu.dot_dimension_numbers<[1], [0], [0], [1], [0, 0, 1, 1], [], []>} : vector<136x256xf32>, vector<256x256xf32>, vector<136x256xf32> -> vector<136x256xf32>
    %c0_9 = arith.constant 0 : index
    %c0_10 = arith.constant 0 : index
    %10 = vector.load %arg5[%c0_9, %c0_10] : memref<1x256xf32, #tpu.memory_space<vmem>>, vector<1x256xf32>
    %11 = vector.broadcast %10 : vector<1x256xf32> to vector<136x256xf32>
    %12 = arith.addf %9, %11 : vector<136x256xf32>
    %cst_11 = arith.constant 0.000000e+00 : f32
    %13 = vector.broadcast %cst_11 : f32 to vector<136x256xf32>
    %14 = arith.maximumf %12, %13 : vector<136x256xf32>
    %c0_12 = arith.constant 0 : index
    %c0_13 = arith.constant 0 : index
    %15 = vector.load %arg6[%c0_12, %c0_13] : memref<256x128xf32, #tpu.memory_space<vmem>>, vector<256x128xf32>
    %cst_14 = arith.constant dense<0.000000e+00> : vector<136x128xf32>
    %16 = tpu.matmul %14, %15, %cst_14 {dimension_numbers = #tpu.dot_dimension_numbers<[1], [0], [0], [1], [0, 0, 1, 1], [], []>} : vector<136x256xf32>, vector<256x128xf32>, vector<136x128xf32> -> vector<136x128xf32>
    %c0_15 = arith.constant 0 : index
    %c0_16 = arith.constant 0 : index
    %17 = vector.load %arg7[%c0_15, %c0_16] : memref<1x128xf32, #tpu.memory_space<vmem>>, vector<1x128xf32>
    %18 = vector.broadcast %17 : vector<1x128xf32> to vector<136x128xf32>
    %19 = arith.addf %16, %18 : vector<136x128xf32>
    %c0_17 = arith.constant 0 : index
    %c0_18 = arith.constant 0 : index
    %20 = vector.load %arg8[%c0_17, %c0_18] : memref<136x128xf32, #tpu.memory_space<vmem>>, vector<136x128xf32>
    tpu.vector_store %arg8[%c0_17, %c0_18], %19 {strides = array<i32>} : memref<136x128xf32, #tpu.memory_space<vmem>>, vector<136x128xf32>,
    return
  }
  func.func @transform_0(%arg0: i32) -> (i32, i32) {
    %c0_i32 = arith.constant 0 : i32
    %c0_i32_0 = arith.constant 0 : i32
    return %arg0, %c0_i32 : i32, i32
  }
  func.func @transform_1(%arg0: i32) -> (i32, i32) {
    %c0_i32 = arith.constant 0 : i32
    %c0_i32_0 = arith.constant 0 : i32
    %c0_i32_1 = arith.constant 0 : i32
    return %c0_i32, %c0_i32_0 : i32, i32
  }
  func.func @transform_2(%arg0: i32) -> (i32, i32) {
    %c0_i32 = arith.constant 0 : i32
    %c0_i32_0 = arith.constant 0 : i32
    %c0_i32_1 = arith.constant 0 : i32
    return %c0_i32, %c0_i32_0 : i32, i32
  }
  func.func @transform_3(%arg0: i32) -> (i32, i32) {
    %c0_i32 = arith.constant 0 : i32
    %c0_i32_0 = arith.constant 0 : i32
    %c0_i32_1 = arith.constant 0 : i32
    return %c0_i32, %c0_i32_0 : i32, i32
  }
  func.func @transform_4(%arg0: i32) -> (i32, i32) {
    %c0_i32 = arith.constant 0 : i32
    %c0_i32_0 = arith.constant 0 : i32
    %c0_i32_1 = arith.constant 0 : i32
    return %c0_i32, %c0_i32_0 : i32, i32
  }
  func.func @transform_5(%arg0: i32) -> (i32, i32) {
    %c0_i32 = arith.constant 0 : i32
    %c0_i32_0 = arith.constant 0 : i32
    %c0_i32_1 = arith.constant 0 : i32
    return %c0_i32, %c0_i32_0 : i32, i32
  }
  func.func @transform_6(%arg0: i32) -> (i32, i32) {
    %c0_i32 = arith.constant 0 : i32
    %c0_i32_0 = arith.constant 0 : i32
    %c0_i32_1 = arith.constant 0 : i32
    return %c0_i32, %c0_i32_0 : i32, i32
  }
  func.func @transform_7(%arg0: i32) -> (i32, i32) {
    %c0_i32 = arith.constant 0 : i32
    %c0_i32_0 = arith.constant 0 : i32
    return %arg0, %c0_i32 : i32, i32
  }
}

</mosaic_0001>

<bundles_post_ra>
// kernel: tpu_custom_call.1
= control target key start
LH: loop header
LB: loop body
LE: loop exit
PB: predicated region body
PF: predicated region fallthrough
CT: control target
= control target key end

     0   :  { %12 = vsyncpa [#allocation3], 0  ;;  %s2008_s0 = inlined_call_operand.vmem [shape: f32[260,16], index: 0, kind: input, shape index: {}]   ;;  %s2009_s1 = inlined_call_operand.vmem [shape: f32[16,256], index: 1, kind: input, shape index: {}]   ;;  %s2010_s2 = inlined_call_operand.vmem [shape: f32[1,256], index: 2, kind: input, shape index: {}]   ;;  %s2011_s3 = inlined_call_operand.hbm [shape: f32[256,256], index: 3, kind: input, shape index: {}]   ;;  %s2012_s4 = inlined_call_operand.vmem [shape: f32[1,256], index: 4, kind: input, shape index: {}]   ;;  %s2013_s5 = inlined_call_operand.vmem [shape: f32[256,128], index: 5, kind: input, shape index: {}]   ;;  %s2014_s6 = inlined_call_operand.vmem [shape: f32[1,128], index: 6, kind: input, shape index: {}]   ;;  %s2015_s7 = inlined_call_operand.hbm [shape: f32[260,128], index: 7, kind: output, shape index: {}]  }
   0x1   :  { %13 = vsyncpa [#allocation4], 0 }
   0x2   :  { %15 = vsyncpa [#allocation4 + $0x1], 0  ;;  %s1533_s24 = smov 0   ;;  %s1535_s25 = smov 0  }
   0x3   :  { %s1537_s26 = smov 0   ;;  %s1539_s27 = smov 0  }
   0x4 LB: > { %s1554_s28 = sadd.s32 4294967295, %s1483_s27   ;;  %s1182_s29 = sadd.s32 4294967294, %s1483_s27   ;;  %s1483_s27 = sphi %s1539_s27, %s2030_s27   ;;  %s1479_s26 = sphi %s1537_s26, %s2029_s26   ;;  %s1475_s25 = sphi %s1535_s25, %s2028_s25   ;;  %s1471_s24 = sphi %s1533_s24, %s2027_s24  }
   0x5   : > { %s1558_s30 = sadd.s32 1, %s1483_s27   ;;  %s180_s8 = sadd.s32 1, %s1479_s26 }
   0x6   : > { %s177_s9 = ssub.s32 %s1483_s27, %s1558_s30  ;;  %p190_p0 = scmp.ne.s32.totalorder %s1479_s26, %s1475_s25 }
   0x7   : > { %p178_p1 = scmp.eq.s32.totalorder %s177_s9, 0  ;;  %p191_p2 = scmp.eq.s32.totalorder %s1554_s28, 1 }
   0x8   : > { %p196_p3 = scmp.ne.s32.totalorder %s1475_s25, %s1471_s24  ;;  %p197_p4 = scmp.eq.s32.totalorder %s1182_s29, 1 }
   0x9   : > { %s1569_s10 = scalar_select %p178_p1, %s1479_s26, %s180_s8  }
   0xa   : > { %p1571_p5 = por %p191_p2, %p190_p0  ;;  %p1575_p6 = por %p197_p4, %p196_p3 }
   0xb   : > { %p1183_p7 = scmp.ge.s32.totalorder %s1483_s27, 1  ;;  %p204_p8 = scmp.lt.s32.totalorder %s1483_s27, 3 }
   0xc   : > { %s2018_s11 = scalar_select %p1571_p5, 1, 0 }
   0xd   : > { %s2019_s12 = scalar_select %p1575_p6, 1, 0 }
   0xe   : > { %p2016_p9 = scmp.eq.s32.totalorder %s1554_s28, 0  ;;  %p1582_p10 = pnand %p1183_p7, %p204_p8 }
   0xf   : > { %s1485_s14 = smov [#allocation2]   ;;  %s1389_s19 = scalar_lea.hbm %s2011_s3, 8192 }
  0x10   : > { %s2020_s13 = scalar_select %p1582_p10, 1, 0 }
  0x11   : > { %s222_s15 = sshll.u32 %s1485_s14, 4  ;;  %p1339_p11 = pneg %p1582_p10  ;;  %s223_s15 = int_to_ptr.vmem [resolvable:$true] %s222_s15 }
  0x12   : > { %p1390_p13 = scmp.ne.s32.totalorder %s2011_s3, %s1389_s19  ;;  %p1396_p3 = scmp.lt.u32.totalorder %s1389_s19, %s2011_s3 }
  0x13   : > { %p1590_p12 = pnand %p2016_p9, %p1339_p11 }
  0x15   : > { %p1391_p0 = pneg %p1590_p12 }
  0x17   : > { %p1392_p1 = pnand %p1391_p0, %p1390_p13 }
  0x19   : > { %p1393_p2 = pneg %p1392_p1 }
  0x1b   : > { %p1398_p4 = pnand %p1396_p3, %p1393_p2 }
  0x1d   : > { %1401 = shalt.err (!%p1398_p4)
}
  0x1e   : > { %s1402_s29 = scalar_lea.vmem %s223_s15, 8192  ;;  %p1410_p9 = scmp.lt.s32.totalorder %s223_s15, %s223_s15 }
  0x1f   : > { %p1403_p7 = scmp.ne.s32.totalorder %s223_s15, %s1402_s29  ;;  %p1411_p6 = scmp.lt.s32.totalorder %s1402_s29, %s1402_s29 }
  0x21   : > { %p1405_p8 = pnand %p1403_p7, %p1391_p0  ;;  %p1412_p5 = por %p1411_p6, %p1410_p9 }
  0x23   : > { %p1406_p11 = pneg %p1405_p8 }
  0x25   : > { %p1413_p10 = pnand %p1412_p5, %p1406_p11 }
  0x27   : > { %1416 = shalt.err (!%p1413_p10)
}
  0x28   : > { %s1486_s8 = smov 256   ;;  %s1487_s9 = smov 16  }
  0x29   : > { %1342 = dma.hbm_to_vmem [thread:$0]  (!%p1590_p12), %s2011_s3, 8192, %s223_s15, [#allocation3], %s1486_s8, %s1486_s8, %s1487_s9  }
  0x2a   : > { %p2022_p13 = scmp.ne.s32.totalorder %s2020_s13, 0 }
  0x2b   : > { %p2023_p1 = scmp.eq.s32.totalorder (!%p2022_p13), %s1554_s28, 0 }
  0x2c   : > { %264 = sbr.rel (%p2022_p13) target bundleno = 804 (0x324), region = 48 }
  0x33   : > { %1462 = dma.done.wait (%p2023_p1), [#allocation3], 8192   ;;  %p2024_p0 = pmov %p2023_p1 }
  0x34   : > { %s1617_s18 = smul.u32 17, %s1554_s28  ;;  %v1488_v0 = vmov 0.0   ;;  %v337_v1 = vld [vmem:[%s2009_s1 + $0x8] sm:$0xff]  ;;  %v339_v2 = vld [vmem:[%s2009_s1 + $0x18] sm:$0xff]  ;;  %v336_v3 = vld [vmem:[%s2009_s1] sm:$0xff]  ;;  %vm352_vm0 = vcmask 130048  }
  0x35   : > { %1464 = vsyncadd (%p2024_p0), [#allocation3], 4294959104  ;;  %468 = vmatprep.mubr.f32.mxu0 %v1488_v0  ;;  %564 = vmatprep.mubr.f32.mxu1 %v1488_v0  ;;  %v1215_v4 = vpack.c.bf16 %v339_v2, %v337_v1  ;;  %v338_v5 = vld [vmem:[%s2009_s1 + $0x10] sm:$0xff]  ;;  %v606_v10 = vld [vmem:[#allocation2 + $0x8] sm:$0xff]  ;;  %s297_s19 = sand.u32 1, %s1475_s25   ;;  %p2025_p6 = scmp.ne.s32.totalorder %s2018_s11, 0 }
  0x36   : > { %p305_p5 = scmp.lt.s32.totalorder %s1617_s18, 32  ;;  %v1217_v6 = vpack.c.bf16 %v338_v5, %v336_v3  ;;  %v608_v11 = vld [vmem:[#allocation2 + $0x18] sm:$0xff]  ;;  %v605_v12 = vld [vmem:[#allocation2] sm:$0xff]  ;;  %v607_v14 = vld [vmem:[#allocation2 + $0x10] sm:$0xff]  ;;  %s1333_s20 = smul.u32 136, %s297_s19 }
  0x37   : > { %1216 = vmatprep.subr.bf16.mxu0 %v1215_v4  ;;  %1331 = vmatprep.subr.bf16.mxu1 %v1215_v4  ;;  %v1219_v13 = vpack.c.bf16 %v608_v11, %v606_v10  ;;  %v610_v15 = vld [vmem:[#allocation2 + $0x28] sm:$0xff]  ;;  %v612_v16 = vld [vmem:[#allocation2 + $0x38] sm:$0xff]  ;;  %v1221_v17 = vpack.c.bf16 %v607_v14, %v605_v12  ;;  %v609_v19 = vld [vmem:[#allocation2 + $0x20] sm:$0xff]  ;;  %s1947_s29 = scalar_lea.sflag [#allocation4], %s297_s19  ;;  %s1097_s8 = ssub.s32 (%p2025_p6), 33, %s1617_s18 }
  0x38   : > { %s306_s15 = scalar_select %p305_p5, %s1617_s18, 32  ;;  %1218 = vmatpush1.bf16.msra.mxu0 %v1217_v6  ;;  %1332 = vmatpush1.bf16.msra.mxu1 %v1217_v6  ;;  %v1223_v18 = vpack.c.bf16 %v612_v16, %v610_v15  ;;  %v611_v20 = vld [vmem:[#allocation2 + $0x30] sm:$0xff]  ;;  %v614_v21 = vld [vmem:[#allocation2 + $0x48] sm:$0xff]  ;;  %v616_v22 = vld [vmem:[#allocation2 + $0x58] sm:$0xff] }
  0x39   : > { %1220 = vmatprep.subr.bf16.mxu1 %v1219_v13  ;;  %v1225_v23 = vpack.c.bf16 %v611_v20, %v609_v19  ;;  %v1227_v25 = vpack.c.bf16 %v616_v22, %v614_v21  ;;  %v613_v26 = vld [vmem:[#allocation2 + $0x40] sm:$0xff]  ;;  %v615_v27 = vld [vmem:[#allocation2 + $0x50] sm:$0xff]  ;;  %v618_v28 = vld [vmem:[#allocation2 + $0x68] sm:$0xff]  ;;  %s1910_s23 = scalar_lea.vmem [#allocation5], %s1333_s20  ;;  %p1098_p9 = scmp.lt.s32.totalorder (%p2025_p6), %s1097_s8, 17 }
  0x3a   : > { %s1188_s13 = sshll.u32 %s306_s15, 3  ;;  %v620_v29 = vld [vmem:[#allocation2 + $0x78] sm:$0xff]  ;;  %v1229_v30 = vpack.c.bf16 %v615_v27, %v613_v26  ;;  %v617_v33 = vld [vmem:[#allocation2 + $0x60] sm:$0xff]  ;;  %v619_v34 = vld [vmem:[#allocation2 + $0x70] sm:$0xff] }
  0x3b   : > { %s1638_s17 = scalar_lea.vmem %s2008_s0, %s1188_s13  ;;  %v1231_v32 = vpack.c.bf16 %v620_v29, %v618_v28  ;;  %v622_v35 = vld [vmem:[#allocation2 + $0x88] sm:$0xff]  ;;  %v624_v36 = vld [vmem:[#allocation2 + $0x98] sm:$0xff]  ;;  %v1233_v37 = vpack.c.bf16 %v619_v34, %v617_v33  ;;  %v621_v40 = vld [vmem:[#allocation2 + $0x80] sm:$0xff] }
  0x3c   : > { %v319_v7 = vld [vmem:[%s1638_s17] sm:$0xff]  ;;  %v320_v8 = vld [vmem:[%s1638_s17 + $0x8] sm:$0xff]  ;;  %v321_v24 = vld [vmem:[%s1638_s17 + $0x10] sm:$0xff]  ;;  %v1235_v39 = vpack.c.bf16 %v624_v36, %v622_v35 }
  0x3d   : > { %v335_v9 = vld [vmem:[%s1638_s17 + $0x80] sm:$0xff]  ;;  %1189 = vmatmul.mubr.msk.f32.vlgmr.msra.gmra.mrb[0].mxu0 %vm352_vm0, %v319_v7  ;;  %v322_v31 = vld [vmem:[%s1638_s17 + $0x18] sm:$0xff]  ;;  %v623_v41 = vld [vmem:[#allocation2 + $0x90] sm:$0xff] }
  0x3e   : > { %1205 = vmatmul.mubr.msk.f32.vlgmr.msra.gmra.mrb[0].mxu1 %vm352_vm0, %v335_v9  ;;  %474 = vmatprep.mubr.f32.mxu0 %v1488_v0  ;;  %v323_v38 = vld [vmem:[%s1638_s17 + $0x20] sm:$0xff]  ;;  %v626_v42 = vld [vmem:[#allocation2 + $0xa8] sm:$0xff]  ;;  %v628_v43 = vld [vmem:[#allocation2 + $0xb8] sm:$0xff]  ;;  %v1237_v44 = vpack.c.bf16 %v623_v41, %v621_v40 }
  0x3f   : > { %1222 = vmatpush1.bf16.msra.mxu1 %v1221_v17  ;;  %v324_v45 = vld [vmem:[%s1638_s17 + $0x28] sm:$0xff]  ;;  %v1239_v46 = vpack.c.bf16 %v628_v43, %v626_v42  ;;  %v625_v47 = vld [vmem:[#allocation2 + $0xa0] sm:$0xff]  ;;  %v627_v48 = vld [vmem:[#allocation2 + $0xb0] sm:$0xff] }
  0x40   : > { %1224 = vmatprep.subr.bf16.mxu1 %v1223_v18  ;;  %v630_v49 = vld [vmem:[#allocation2 + $0xc8] sm:$0xff]  ;;  %v632_v50 = vld [vmem:[#allocation2 + $0xd8] sm:$0xff]  ;;  %v1241_v51 = vpack.c.bf16 %v627_v48, %v625_v47  ;;  %v325_v52 = vld [vmem:[%s1638_s17 + $0x30] sm:$0xff] }
  0x41   : > { %1190 = vmatmul.mubr.msk.f32.gmra.mrb[2].mxu0 %vm352_vm0, %v320_v8  ;;  %v1243_v53 = vpack.c.bf16 %v632_v50, %v630_v49  ;;  %v629_v54 = vld [vmem:[#allocation2 + $0xc0] sm:$0xff]  ;;  %v631_v55 = vld [vmem:[#allocation2 + $0xd0] sm:$0xff]  ;;  %v634_v56 = vld [vmem:[#allocation2 + $0xe8] sm:$0xff] }
  0x42   : > { %480 = vmatprep.mubr.f32.mxu0 %v1488_v0  ;;  %v636_v57 = vld [vmem:[#allocation2 + $0xf8] sm:$0xff]  ;;  %v1245_v58 = vpack.c.bf16 %v631_v55, %v629_v54  ;;  %v633_v61 = vld [vmem:[#allocation2 + $0xe0] sm:$0xff]  ;;  %v635_v62 = vld [vmem:[#allocation2 + $0xf0] sm:$0xff] }
  0x43   : > { %1226 = vmatpush1.bf16.msra.mxu1 %v1225_v23  ;;  %v326_v59 = vld [vmem:[%s1638_s17 + $0x38] sm:$0xff]  ;;  %v1247_v60 = vpack.c.bf16 %v636_v57, %v634_v56  ;;  %v638_v63 = vld [vmem:[#allocation2 + $0x108] sm:$0xff]  ;;  %v1249_v2 = vpack.c.bf16 %v635_v62, %v633_v61  ;;  %v327_v3 = vld [vmem:[%s1638_s17 + $0x40] sm:$0xff] }
  0x44   : > { %1228 = vmatprep.subr.bf16.mxu1 %v1227_v25  ;;  %v640_v1 = vld [vmem:[#allocation2 + $0x118] sm:$0xff]  ;;  %v637_v5 = vld [vmem:[#allocation2 + $0x100] sm:$0xff]  ;;  %v639_v6 = vld [vmem:[#allocation2 + $0x110] sm:$0xff] }
  0x45   : > { %1191 = vmatmul.mubr.msk.f32.gmra.mrb[4].mxu0 %vm352_vm0, %v321_v24  ;;  %v1251_v4 = vpack.c.bf16 %v640_v1, %v638_v63  ;;  %v642_v7 = vld [vmem:[#allocation2 + $0x128] sm:$0xff]  ;;  %v644_v8 = vld [vmem:[#allocation2 + $0x138] sm:$0xff]  ;;  %v1253_v9 = vpack.c.bf16 %v639_v6, %v637_v5  ;;  %v641_v12 = vld [vmem:[#allocation2 + $0x120] sm:$0xff] }
  0x46   : > { %486 = vmatprep.mubr.f32.mxu0 %v1488_v0  ;;  %v328_v10 = vld [vmem:[%s1638_s17 + $0x48] sm:$0xff]  ;;  %v1255_v11 = vpack.c.bf16 %v644_v8, %v642_v7  ;;  %v643_v13 = vld [vmem:[#allocation2 + $0x130] sm:$0xff]  ;;  %v648_v15 = vld [vmem:[#allocation2 + $0x158] sm:$0xff] }
  0x47   : > { %1230 = vmatpush1.bf16.msra.mxu1 %v1229_v30  ;;  %v646_v14 = vld [vmem:[#allocation2 + $0x148] sm:$0xff]  ;;  %v1257_v16 = vpack.c.bf16 %v643_v13, %v641_v12  ;;  %v329_v17 = vld [vmem:[%s1638_s17 + $0x50] sm:$0xff]  ;;  %v645_v19 = vld [vmem:[#allocation2 + $0x140] sm:$0xff] }
  0x48   : > { %1232 = vmatprep.subr.bf16.mxu1 %v1231_v32  ;;  %v1259_v18 = vpack.c.bf16 %v648_v15, %v646_v14  ;;  %v647_v20 = vld [vmem:[#allocation2 + $0x150] sm:$0xff]  ;;  %v650_v21 = vld [vmem:[#allocation2 + $0x168] sm:$0xff]  ;;  %v652_v22 = vld [vmem:[#allocation2 + $0x178] sm:$0xff] }
  0x49   : > { %1192 = vmatmul.mubr.msk.f32.gmra.mrb[6].mxu0 %vm352_vm0, %v322_v31  ;;  %v1261_v23 = vpack.c.bf16 %v647_v20, %v645_v19  ;;  %v330_v24 = vld [vmem:[%s1638_s17 + $0x58] sm:$0xff]  ;;  %v1263_v25 = vpack.c.bf16 %v652_v22, %v650_v21  ;;  %v649_v26 = vld [vmem:[#allocation2 + $0x160] sm:$0xff]  ;;  %v651_v27 = vld [vmem:[#allocation2 + $0x170] sm:$0xff] }
  0x4a   : > { %492 = vmatprep.mubr.f32.mxu0 %v1488_v0  ;;  %v654_v28 = vld [vmem:[#allocation2 + $0x188] sm:$0xff]  ;;  %v656_v29 = vld [vmem:[#allocation2 + $0x198] sm:$0xff]  ;;  %v1265_v30 = vpack.c.bf16 %v651_v27, %v649_v26  ;;  %v331_v31 = vld [vmem:[%s1638_s17 + $0x60] sm:$0xff] }
  0x4b   : > { %1234 = vmatpush1.bf16.msra.mxu1 %v1233_v37  ;;  %v1267_v32 = vpack.c.bf16 %v656_v29, %v654_v28  ;;  %v653_v33 = vld [vmem:[#allocation2 + $0x180] sm:$0xff]  ;;  %v655_v34 = vld [vmem:[#allocation2 + $0x190] sm:$0xff]  ;;  %v658_v35 = vld [vmem:[#allocation2 + $0x1a8] sm:$0xff]  ;;  %v342_v29 = vlaneseq }
  0x4c   : > { %1236 = vmatprep.subr.bf16.mxu1 %v1235_v39  ;;  %v660_v36 = vld [vmem:[#allocation2 + $0x1b8] sm:$0xff]  ;;  %v1269_v37 = vpack.c.bf16 %v655_v34, %v653_v33  ;;  %v657_v40 = vld [vmem:[#allocation2 + $0x1a0] sm:$0xff]  ;;  %v659_v41 = vld [vmem:[#allocation2 + $0x1b0] sm:$0xff] }
  0x4d   : > { %1193 = vmatmul.mubr.msk.f32.gmra.mrb[8].mxu0 %vm352_vm0, %v323_v38  ;;  %v332_v38 = vld [vmem:[%s1638_s17 + $0x68] sm:$0xff]  ;;  %v1271_v39 = vpack.c.bf16 %v660_v36, %v658_v35  ;;  %v664_v43 = vld [vmem:[#allocation2 + $0x1d8] sm:$0xff]  ;;  %v661_v48 = vld [vmem:[#allocation2 + $0x1c0] sm:$0xff]  ;;  %v1779_v33 = vshrl.u32 %v342_v29, 7 }
  0x4e   : > { %498 = vmatprep.mubr.f32.mxu0 %v1488_v0  ;;  %v662_v42 = vld [vmem:[#allocation2 + $0x1c8] sm:$0xff]  ;;  %v334_v47 = vld [vmem:[%s1638_s17 + $0x78] sm:$0xff]  ;;  %v663_v49 = vld [vmem:[#allocation2 + $0x1d0] sm:$0xff] }
  0x4f   : > { %1238 = vmatpush1.bf16.msra.mxu1 %v1237_v44  ;;  %v1273_v44 = vpack.c.bf16 %v659_v41, %v657_v40  ;;  %v1277_v50 = vpack.c.bf16 %v663_v49, %v661_v48  ;;  %v665_v54 = vld [vmem:[#allocation2 + $0x1e0] sm:$0xff]  ;;  %v667_v55 = vld [vmem:[#allocation2 + $0x1f0] sm:$0xff]  ;;  %v883_v57 = vld [vmem:[%s2013_s5 + $0x8] sm:$0xff] }
  0x50   : > { %1240 = vmatprep.subr.bf16.mxu1 %v1239_v46  ;;  %v1275_v46 = vpack.c.bf16 %v664_v43, %v662_v42  ;;  %v1281_v56 = vpack.c.bf16 %v667_v55, %v665_v54  ;;  %v885_v61 = vld [vmem:[%s2013_s5 + $0x18] sm:$0xff]  ;;  %v886_v63 = vld [vmem:[%s2013_s5 + $0x20] sm:$0xff]  ;;  %v887_v1 = vld [vmem:[%s2013_s5 + $0x28] sm:$0xff] }
  0x51   : > { %1194 = vmatmul.mubr.msk.f32.gmra.mrb[10].mxu0 %vm352_vm0, %v324_v45  ;;  %v333_v45 = vld [vmem:[%s1638_s17 + $0x70] sm:$0xff]  ;;  %v890_v6 = vld [vmem:[%s2013_s5 + $0x40] sm:$0xff]  ;;  %v891_v7 = vld [vmem:[%s2013_s5 + $0x48] sm:$0xff] }
  0x52   : > { %504 = vmatprep.mubr.f32.mxu0 %v1488_v0  ;;  %v1296_v8 = vpack.c.bf16 %v891_v7, %v890_v6  ;;  %v894_v12 = vld [vmem:[%s2013_s5 + $0x60] sm:$0xff]  ;;  %v895_v13 = vld [vmem:[%s2013_s5 + $0x68] sm:$0xff]  ;;  %v896_v15 = vld [vmem:[%s2013_s5 + $0x70] sm:$0xff] }
  0x53   : > { %1242 = vmatpush1.bf16.msra.mxu1 %v1241_v51  ;;  %v666_v51 = vld [vmem:[#allocation2 + $0x1e8] sm:$0xff]  ;;  %v1302_v14 = vpack.c.bf16 %v895_v13, %v894_v12  ;;  %v900_v21 = vld [vmem:[%s2013_s5 + $0x90] sm:$0xff]  ;;  %v901_v22 = vld [vmem:[%s2013_s5 + $0x98] sm:$0xff] }
  0x54   : > { %1244 = vmatprep.subr.bf16.mxu1 %v1243_v53  ;;  %v899_v19 = vld [vmem:[%s2013_s5 + $0x88] sm:$0xff]  ;;  %v904_v27 = vld [vmem:[%s2013_s5 + $0xb0] sm:$0xff]  ;;  %v905_v28 = vld [vmem:[%s2013_s5 + $0xb8] sm:$0xff] }
  0x55   : > { %1195 = vmatmul.mubr.msk.f32.gmra.mrb[12].mxu0 %vm352_vm0, %v325_v52  ;;  %v668_v52 = vld [vmem:[#allocation2 + $0x1f8] sm:$0xff]  ;;  %v908_v35 = vld [vmem:[%s2013_s5 + $0xd0] sm:$0xff]  ;;  %v910_v41 = vld [vmem:[%s2013_s5 + $0xe0] sm:$0xff] }
  0x56   : > { %510 = vmatprep.mubr.f32.mxu0 %v1488_v0  ;;  %v1279_v53 = vpack.c.bf16 %v668_v52, %v666_v51  ;;  %v909_v36 = vld [vmem:[%s2013_s5 + $0xd8] sm:$0xff]  ;;  %v911_v42 = vld [vmem:[%s2013_s5 + $0xe8] sm:$0xff] }
  0x57   : > { %1246 = vmatpush1.bf16.msra.mxu1 %v1245_v58  ;;  %v884_v58 = vld [vmem:[%s2013_s5 + $0x10] sm:$0xff]  ;;  %v1323_v40 = vpack.c.bf16 %v909_v36, %v908_v35 }
  0x58   : > { %1248 = vmatprep.subr.bf16.mxu1 %v1247_v60  ;;  %v1287_v62 = vpack.c.bf16 %v885_v61, %v884_v58 }
  0x59   : > { %1196 = vmatmul.mubr.msk.f32.gmra.mrb[14].mxu0 %vm352_vm0, %v326_v59  ;;  %v1489_v59 = vmov 0.0|0.0  }
  0x5a   : > { %516 = vmatprep.mubr.f32.mxu0 %v1488_v0  ;;  %1283 = vmatprep.subr.bf16.mxu0 %v1489_v59 }
  0x5b   : > { %1250 = vmatpush1.bf16.msra.mxu1 %v1249_v2  ;;  %v1290_v2 = vpack.c.bf16 %v887_v1, %v886_v63 }
  0x5c   : > { %1252 = vmatprep.subr.bf16.mxu1 %v1251_v4  ;;  %v889_v4 = vld [vmem:[%s2013_s5 + $0x38] sm:$0xff] }
  0x5d   : > { %1197 = vmatmul.mubr.msk.f32.gmra.mrb[16].mxu0 %vm352_vm0, %v327_v3  ;;  %v888_v3 = vld [vmem:[%s2013_s5 + $0x30] sm:$0xff] }
  0x5e   : > { %522 = vmatprep.mubr.f32.mxu0 %v1488_v0  ;;  %v1293_v5 = vpack.c.bf16 %v889_v4, %v888_v3 }
  0x5f   : > { %1254 = vmatpush1.bf16.msra.mxu1 %v1253_v9  ;;  %v892_v9 = vld [vmem:[%s2013_s5 + $0x50] sm:$0xff] }
  0x60   : > { %1256 = vmatprep.subr.bf16.mxu1 %v1255_v11 }
  0x61   : > { %1198 = vmatmul.mubr.msk.f32.gmra.mrb[18].mxu0 %vm352_vm0, %v328_v10  ;;  %v893_v10 = vld [vmem:[%s2013_s5 + $0x58] sm:$0xff] }
  0x62   : > { %528 = vmatprep.mubr.f32.mxu0 %v1488_v0  ;;  %v1299_v11 = vpack.c.bf16 %v893_v10, %v892_v9 }
  0x63   : > { %1258 = vmatpush1.bf16.msra.mxu1 %v1257_v16  ;;  %v897_v16 = vld [vmem:[%s2013_s5 + $0x78] sm:$0xff] }
  0x64   : > { %1260 = vmatprep.subr.bf16.mxu1 %v1259_v18  ;;  %v898_v18 = vld [vmem:[%s2013_s5 + $0x80] sm:$0xff] }
  0x65   : > { %1199 = vmatmul.mubr.msk.f32.gmra.mrb[20].mxu0 %vm352_vm0, %v329_v17  ;;  %v1305_v17 = vpack.c.bf16 %v897_v16, %v896_v15  ;;  %v1308_v20 = vpack.c.bf16 %v899_v19, %v898_v18 }
  0x66   : > { %534 = vmatprep.mubr.f32.mxu0 %v1488_v0 }
  0x67   : > { %1262 = vmatpush1.bf16.msra.mxu1 %v1261_v23  ;;  %v1311_v23 = vpack.c.bf16 %v901_v22, %v900_v21 }
  0x68   : > { %1264 = vmatprep.subr.bf16.mxu1 %v1263_v25  ;;  %v903_v25 = vld [vmem:[%s2013_s5 + $0xa8] sm:$0xff] }
  0x69   : > { %1200 = vmatmul.mubr.msk.f32.gmra.mrb[22].mxu0 %vm352_vm0, %v330_v24  ;;  %v902_v24 = vld [vmem:[%s2013_s5 + $0xa0] sm:$0xff] }
  0x6a   : > { %540 = vmatprep.mubr.f32.mxu0 %v1488_v0  ;;  %v1314_v26 = vpack.c.bf16 %v903_v25, %v902_v24 }
  0x6b   : > { %1266 = vmatpush1.bf16.msra.mxu1 %v1265_v30  ;;  %v1317_v30 = vpack.c.bf16 %v905_v28, %v904_v27 }
  0x6c   : > { %1268 = vmatprep.subr.bf16.mxu1 %v1267_v32  ;;  %v907_v32 = vld [vmem:[%s2013_s5 + $0xc8] sm:$0xff] }
  0x6d   : > { %1201 = vmatmul.mubr.msk.f32.gmra.mrb[24].mxu0 %vm352_vm0, %v331_v31  ;;  %v906_v31 = vld [vmem:[%s2013_s5 + $0xc0] sm:$0xff] }
  0x6e   : > { %546 = vmatprep.mubr.f32.mxu0 %v1488_v0  ;;  %v1320_v34 = vpack.c.bf16 %v907_v32, %v906_v31 }
  0x6f   : > { %1270 = vmatpush1.bf16.msra.mxu1 %v1269_v37  ;;  %v344_v37 = vsub.s32 0, %v1779_v33 }
  0x70   : > { %1272 = vmatprep.subr.bf16.mxu1 %v1271_v39  ;;  %v348_v39 = vsub.s32 1, %v1779_v33 }
  0x71   : > { %1202 = vmatmul.mubr.msk.f32.gmra.mrb[26].mxu0 %vm352_vm0, %v332_v38  ;;  %v340_v38 = vld [vmem:[%s2010_s2] sm:$0x3] }
  0x72   : > { %552 = vmatprep.mubr.f32.mxu0 %v1488_v0  ;;  %v1802_v43 = vrot.slane %v340_v38, %v344_v37 }
  0x73   : > { %1274 = vmatpush1.bf16.msra.mxu1 %v1273_v44  ;;  %v1806_v44 = vrot.slane %v340_v38, %v348_v39 }
  0x74   : > { %1276 = vmatprep.subr.bf16.mxu1 %v1275_v46 }
  0x75   : > { %1203 = vmatmul.mubr.msk.f32.gmra.mrb[28].mxu0 %vm352_vm0, %v333_v45  ;;  %v1326_v45 = vpack.c.bf16 %v911_v42, %v910_v41 }
  0x76   : > { %558 = vmatprep.mubr.f32.mxu0 %v1488_v0  ;;  %v882_v0 = vld [vmem:[%s2013_s5] sm:$0xff] }
  0x77   : > { %1278 = vmatpush1.bf16.msra.mxu1 %v1277_v50  ;;  %v1284_v60 = vpack.c.bf16 %v883_v57, %v882_v0 }
  0x78   : > { %1280 = vmatprep.subr.bf16.mxu1 %v1279_v53 }
  0x79   : > { %1204 = vmatmul.mubr.msk.f32.gmra.mrb[30].mxu0 %vm352_vm0, %v334_v47 }
  0x7a   : > { %1285 = vmatpush1.bf16.msra.mxu0 %v1284_v60 }
  0x7b   : > { %1282 = vmatpush1.bf16.msra.mxu1 %v1281_v56  ;;  %1286 = vmatprep.subr.bf16.mxu0 %v1489_v59 }
  0x7e   : > { %1288 = vmatpush1.bf16.msra.mxu0 %v1287_v62 }
  0x7f   : > { %1289 = vmatprep.subr.bf16.mxu0 %v1489_v59 }
  0x82   : > { %1291 = vmatpush1.bf16.msra.mxu0 %v1290_v2 }
  0x83   : > { %1292 = vmatprep.subr.bf16.mxu0 %v1489_v59 }
  0x86   : > { %1294 = vmatpush1.bf16.msra.mxu0 %v1293_v5 }
  0x87   : > { %1295 = vmatprep.subr.bf16.mxu0 %v1489_v59 }
  0x8a   : > { %1297 = vmatpush1.bf16.msra.mxu0 %v1296_v8 }
  0x8b   : > { %1298 = vmatprep.subr.bf16.mxu0 %v1489_v59 }
  0x8e   : > { %1300 = vmatpush1.bf16.msra.mxu0 %v1299_v11 }
  0x8f   : > { %1301 = vmatprep.subr.bf16.mxu0 %v1489_v59 }
  0x92   : > { %1303 = vmatpush1.bf16.msra.mxu0 %v1302_v14 }
  0x93   : > { %1304 = vmatprep.subr.bf16.mxu0 %v1489_v59 }
  0x96   : > { %1306 = vmatpush1.bf16.msra.mxu0 %v1305_v17 }
  0x97   : > { %1307 = vmatprep.subr.bf16.mxu0 %v1489_v59 }
  0x9a   : > { %1309 = vmatpush1.bf16.msra.mxu0 %v1308_v20 }
  0x9b   : > { %1310 = vmatprep.subr.bf16.mxu0 %v1489_v59 }
  0x9e   : > { %1312 = vmatpush1.bf16.msra.mxu0 %v1311_v23 }
  0x9f   : > { %1313 = vmatprep.subr.bf16.mxu0 %v1489_v59 }
  0xa2   : > { %1315 = vmatpush1.bf16.msra.mxu0 %v1314_v26 }
  0xa3   : > { %1316 = vmatprep.subr.bf16.mxu0 %v1489_v59 }
  0xa6   : > { %1318 = vmatpush1.bf16.msra.mxu0 %v1317_v30 }
  0xa7   : > { %1319 = vmatprep.subr.bf16.mxu0 %v1489_v59 }
  0xaa   : > { %1321 = vmatpush1.bf16.msra.mxu0 %v1320_v34 }
  0xab   : > { %1322 = vmatprep.subr.bf16.mxu0 %v1489_v59 }
  0xae   : > { %1324 = vmatpush1.bf16.msra.mxu0 %v1323_v40 }
  0xaf   : > { %1325 = vmatprep.subr.bf16.mxu0 %v1489_v59 }
  0xb2   : > { %1327 = vmatpush1.bf16.msra.mxu0 %v1326_v45 }
  0xb3   : > { %1328 = vmatprep.subr.bf16.mxu0 %v1489_v59 }
 0x110   : > { %v470_v46 = vpop.f32.mrb[0].mxu0 }
 0x111   : > { %v566_v47 = vpop.f32.mrb[0].mxu1  ;;  %v471_v48 = vadd.f32 %v470_v46, %v1802_v43  ;;  %v472_v49 = vpop.f32.mrb[1].mxu0 }
 0x112   : > { %v1811_v50 = vadd.f32 %v566_v47, %v1802_v43  ;;  %v1813_v51 = vpop.f32.mrb[1].mxu1  ;;  %v473_v52 = vadd.f32 %v472_v49, %v1806_v44 }
 0x113   : > { %v571_v55 = vmax.f32 %v471_v48, 0.0 }
 0x114   : > { %v572_v53 = vmax.f32 %v473_v52, 0.0  ;;  %v476_v54 = vpop.f32.mrb[2].mxu0 }
 0x115   : > { %v477_v56 = vadd.f32 %v476_v54, %v1802_v43  ;;  %v478_v0 = vpop.f32.mrb[3].mxu0 }
 0x116   : > { %v479_v57 = vadd.f32 %v478_v0, %v1806_v44  ;;  %745 = vmatprep.mubr.f32.mxu1 %v572_v53 }
 0x117   : > { %746 = vmatmul.mubr.f32.vlgmr.msra.gmra.mrb[2].mxu1 %v571_v55  ;;  %v573_v61 = vmax.f32 %v477_v56, 0.0 }
 0x118   : > { %v574_v58 = vmax.f32 %v479_v57, 0.0  ;;  %v482_v60 = vpop.f32.mrb[4].mxu0 }
 0x119   : > { %v483_v62 = vadd.f32 %v482_v60, %v1802_v43  ;;  %v484_v63 = vpop.f32.mrb[5].mxu0 }
 0x11a   : > { %v485_v1 = vadd.f32 %v484_v63, %v1806_v44  ;;  %751 = vmatprep.mubr.f32.mxu1 %v574_v58 }
 0x11b   : > { %752 = vmatmul.mubr.f32.gmra.mrb[4].mxu1 %v573_v61  ;;  %v575_v3 = vmax.f32 %v483_v62, 0.0 }
 0x11c   : > { %v576_v59 = vmax.f32 %v485_v1, 0.0  ;;  %v488_v2 = vpop.f32.mrb[6].mxu0 }
 0x11d   : > { %v489_v4 = vadd.f32 %v488_v2, %v1802_v43  ;;  %v490_v5 = vpop.f32.mrb[7].mxu0 }
 0x11e   : > { %v491_v6 = vadd.f32 %v490_v5, %v1806_v44  ;;  %757 = vmatprep.mubr.f32.mxu1 %v576_v59 }
 0x11f   : > { %758 = vmatmul.mubr.f32.gmra.mrb[6].mxu1 %v575_v3  ;;  %v577_v9 = vmax.f32 %v489_v4, 0.0 }
 0x120   : > { %v578_v7 = vmax.f32 %v491_v6, 0.0  ;;  %v494_v8 = vpop.f32.mrb[8].mxu0 }
 0x121   : > { %v495_v10 = vadd.f32 %v494_v8, %v1802_v43  ;;  %v496_v11 = vpop.f32.mrb[9].mxu0 }
 0x122   : > { %v497_v12 = vadd.f32 %v496_v11, %v1806_v44  ;;  %763 = vmatprep.mubr.f32.mxu1 %v578_v7 }
 0x123   : > { %764 = vmatmul.mubr.f32.gmra.mrb[8].mxu1 %v577_v9  ;;  %v579_v15 = vmax.f32 %v495_v10, 0.0 }
 0x124   : > { %v580_v13 = vmax.f32 %v497_v12, 0.0  ;;  %v500_v14 = vpop.f32.mrb[10].mxu0 }
 0x125   : > { %v501_v16 = vadd.f32 %v500_v14, %v1802_v43  ;;  %v502_v17 = vpop.f32.mrb[11].mxu0 }
 0x126   : > { %v503_v18 = vadd.f32 %v502_v17, %v1806_v44  ;;  %769 = vmatprep.mubr.f32.mxu1 %v580_v13 }
 0x127   : > { %770 = vmatmul.mubr.f32.gmra.mrb[10].mxu1 %v579_v15  ;;  %v581_v21 = vmax.f32 %v501_v16, 0.0 }
 0x128   : > { %v582_v19 = vmax.f32 %v503_v18, 0.0  ;;  %v506_v20 = vpop.f32.mrb[12].mxu0  ;;  %v569_v18 = vadd.f32 %v1813_v51, %v1806_v44  ;;  %v912_v51 = vld [vmem:[%s2013_s5 + $0xf0] sm:$0xff] }
 0x129   : > { %v507_v22 = vadd.f32 %v506_v20, %v1802_v43  ;;  %v508_v23 = vpop.f32.mrb[13].mxu0 }
 0x12a   : > { %v509_v24 = vadd.f32 %v508_v23, %v1806_v44  ;;  %775 = vmatprep.mubr.f32.mxu1 %v582_v19 }
 0x12b   : > { %776 = vmatmul.mubr.f32.gmra.mrb[12].mxu1 %v581_v21  ;;  %v583_v27 = vmax.f32 %v507_v22, 0.0 }
 0x12c   : > { %v584_v25 = vmax.f32 %v509_v24, 0.0  ;;  %v512_v26 = vpop.f32.mrb[14].mxu0  ;;  %v604_v24 = vmax.f32 %v569_v18, 0.0 }
 0x12d   : > { %v513_v28 = vadd.f32 %v512_v26, %v1802_v43  ;;  %v514_v29 = vpop.f32.mrb[15].mxu0  ;;  %v603_v26 = vmax.f32 %v1811_v50, 0.0 }
 0x12e   : > { %v515_v30 = vadd.f32 %v514_v29, %v1806_v44  ;;  %781 = vmatprep.mubr.f32.mxu1 %v584_v25 }
 0x12f   : > { %782 = vmatmul.mubr.f32.gmra.mrb[14].mxu1 %v583_v27  ;;  %v585_v34 = vmax.f32 %v513_v28, 0.0  ;;  %v669_v27 = vld [vmem:[%s2012_s4] sm:$0x3] }
 0x130   : > { %v586_v31 = vmax.f32 %v515_v30, 0.0  ;;  %v518_v32 = vpop.f32.mrb[16].mxu0  ;;  %v1861_v28 = vrot.slane %v669_v27, %v344_v37  ;;  %v1865_v50 = vrot.slane %v669_v27, %v348_v39 }
 0x131   : > { %v519_v35 = vadd.f32 %v518_v32, %v1802_v43  ;;  %v520_v36 = vpop.f32.mrb[17].mxu0 }
 0x132   : > { %v521_v38 = vadd.f32 %v520_v36, %v1806_v44  ;;  %787 = vmatprep.mubr.f32.mxu1 %v586_v31 }
 0x133   : > { %788 = vmatmul.mubr.f32.gmra.mrb[16].mxu1 %v585_v34  ;;  %v587_v42 = vmax.f32 %v519_v35, 0.0 }
 0x134   : > { %v588_v40 = vmax.f32 %v521_v38, 0.0  ;;  %v524_v41 = vpop.f32.mrb[18].mxu0 }
 0x135   : > { %v525_v45 = vadd.f32 %v524_v41, %v1802_v43  ;;  %v526_v46 = vpop.f32.mrb[19].mxu0 }
 0x136   : > { %v527_v47 = vadd.f32 %v526_v46, %v1806_v44  ;;  %793 = vmatprep.mubr.f32.mxu1 %v588_v40 }
 0x137   : > { %794 = vmatmul.mubr.f32.gmra.mrb[18].mxu1 %v587_v42  ;;  %v589_v52 = vmax.f32 %v525_v45, 0.0 }
 0x138   : > { %v590_v48 = vmax.f32 %v527_v47, 0.0  ;;  %v530_v49 = vpop.f32.mrb[20].mxu0 }
 0x139   : > { %v531_v53 = vadd.f32 %v530_v49, %v1802_v43  ;;  %v532_v54 = vpop.f32.mrb[21].mxu0 }
 0x13a   : > { %v533_v55 = vadd.f32 %v532_v54, %v1806_v44  ;;  %799 = vmatprep.mubr.f32.mxu1 %v590_v48 }
 0x13b   : > { %800 = vmatmul.mubr.f32.gmra.mrb[20].mxu1 %v589_v52  ;;  %v591_v57 = vmax.f32 %v531_v53, 0.0 }
 0x13c   : > { %v592_v56 = vmax.f32 %v533_v55, 0.0  ;;  %v536_v0 = vpop.f32.mrb[22].mxu0 }
 0x13d   : > { %v537_v58 = vadd.f32 %v536_v0, %v1802_v43  ;;  %v538_v60 = vpop.f32.mrb[23].mxu0 }
 0x13e   : > { %v539_v61 = vadd.f32 %v538_v60, %v1806_v44  ;;  %805 = vmatprep.mubr.f32.mxu1 %v592_v56 }
 0x13f   : > { %806 = vmatmul.mubr.f32.gmra.mrb[22].mxu1 %v591_v57  ;;  %v593_v1 = vmax.f32 %v537_v58, 0.0 }
 0x140   : > { %v594_v62 = vmax.f32 %v539_v61, 0.0  ;;  %v542_v63 = vpop.f32.mrb[24].mxu0 }
 0x141   : > { %v543_v59 = vadd.f32 %v542_v63, %v1802_v43  ;;  %v544_v2 = vpop.f32.mrb[25].mxu0 }
 0x142   : > { %v545_v3 = vadd.f32 %v544_v2, %v1806_v44  ;;  %811 = vmatprep.mubr.f32.mxu1 %v594_v62 }
 0x143   : > { %812 = vmatmul.mubr.f32.gmra.mrb[24].mxu1 %v593_v1  ;;  %v595_v6 = vmax.f32 %v543_v59, 0.0 }
 0x144   : > { %v596_v4 = vmax.f32 %v545_v3, 0.0  ;;  %v548_v5 = vpop.f32.mrb[26].mxu0 }
 0x145   : > { %v549_v7 = vadd.f32 %v548_v5, %v1802_v43  ;;  %v550_v8 = vpop.f32.mrb[27].mxu0 }
 0x146   : > { %v551_v9 = vadd.f32 %v550_v8, %v1806_v44  ;;  %817 = vmatprep.mubr.f32.mxu1 %v596_v4 }
 0x147   : > { %818 = vmatmul.mubr.f32.gmra.mrb[26].mxu1 %v595_v6  ;;  %v597_v12 = vmax.f32 %v549_v7, 0.0 }
 0x148   : > { %v598_v10 = vmax.f32 %v551_v9, 0.0  ;;  %v554_v11 = vpop.f32.mrb[28].mxu0 }
 0x149   : > { %v555_v13 = vadd.f32 %v554_v11, %v1802_v43  ;;  %v556_v14 = vpop.f32.mrb[29].mxu0 }
 0x14a   : > { %v557_v15 = vadd.f32 %v556_v14, %v1806_v44  ;;  %823 = vmatprep.mubr.f32.mxu1 %v598_v10 }
 0x14b   : > { %824 = vmatmul.mubr.f32.gmra.mrb[28].mxu1 %v597_v12  ;;  %v599_v19 = vmax.f32 %v555_v13, 0.0 }
 0x14c   : > { %v600_v16 = vmax.f32 %v557_v15, 0.0  ;;  %v560_v17 = vpop.f32.mrb[30].mxu0 }
 0x14d   : > { %v561_v20 = vadd.f32 %v560_v17, %v1802_v43  ;;  %v562_v21 = vpop.f32.mrb[31].mxu0  ;;  %v913_v43 = vld [vmem:[%s2013_s5 + $0xf8] sm:$0xff] }
 0x14e   : > { %v563_v22 = vadd.f32 %v562_v21, %v1806_v44  ;;  %829 = vmatprep.mubr.f32.mxu1 %v600_v16  ;;  %v1329_v44 = vpack.c.bf16 %v913_v43, %v912_v51 }
 0x14f   : > { %830 = vmatmul.mubr.f32.gmra.mrb[30].mxu1 %v599_v19  ;;  %v601_v25 = vmax.f32 %v561_v20, 0.0 }
 0x150   : > { %v602_v23 = vmax.f32 %v563_v22, 0.0  ;;  %1330 = vmatpush1.bf16.msra.mxu0 %v1329_v44 }
 0x152   : > { %835 = vmatprep.mubr.f32.mxu1 %v602_v23 }
 0x153   : > { %836 = vmatmul.mubr.f32.gmra.mrb[32].mxu1 %v601_v25 }
 0x154   : > { %841 = vmatprep.mubr.f32.mxu1 %v604_v24 }
 0x157   : > { %842 = vmatmul.mubr.f32.gmra.mrb[34].mxu1 %v603_v26 }
 0x1ea   : > { %v747_v29 = vpop.f32.mrb[2].mxu1 }
 0x1eb   : > { %v748_v30 = vadd.f32 %v747_v29, %v1861_v28  ;;  %v749_v31 = vpop.f32.mrb[3].mxu1 }
 0x1ec   : > { %v750_v32 = vadd.f32 %v749_v31, %v1865_v50 }
 0x1ed   : > { %v848_v36 = vmax.f32 %v748_v30, 0.0 }
 0x1ee   : > { %v849_v34 = vmax.f32 %v750_v32, 0.0  ;;  %v753_v35 = vpop.f32.mrb[4].mxu1 }
 0x1ef   : > { %v754_v38 = vadd.f32 %v753_v35, %v1861_v28  ;;  %v755_v40 = vpop.f32.mrb[5].mxu1 }
 0x1f0   : > { %v756_v41 = vadd.f32 %v755_v40, %v1865_v50  ;;  %985 = vmatprep.mubr.f32.mxu0 %v849_v34 }
 0x1f1   : > { %986 = vmatmul.mubr.f32.vlgmr.msra.gmra.mrb[32].mxu0 %v848_v36  ;;  %v850_v39 = vmax.f32 %v754_v38, 0.0 }
 0x1f2   : > { %v851_v37 = vmax.f32 %v756_v41, 0.0  ;;  %v759_v33 = vpop.f32.mrb[6].mxu1 }
 0x1f3   : > { %v760_v42 = vadd.f32 %v759_v33, %v1861_v28  ;;  %v761_v45 = vpop.f32.mrb[7].mxu1 }
 0x1f4   : > { %v762_v46 = vadd.f32 %v761_v45, %v1865_v50  ;;  %990 = vmatprep.mubr.f32.mxu0 %v851_v37 }
 0x1f5   : > { %991 = vmatmul.mubr.f32.gmra.mrb[34].mxu0 %v850_v39  ;;  %v852_v49 = vmax.f32 %v760_v42, 0.0 }
 0x1f6   : > { %v853_v47 = vmax.f32 %v762_v46, 0.0  ;;  %v765_v48 = vpop.f32.mrb[8].mxu1 }
 0x1f7   : > { %v766_v52 = vadd.f32 %v765_v48, %v1861_v28  ;;  %v767_v53 = vpop.f32.mrb[9].mxu1 }
 0x1f8   : > { %v768_v54 = vadd.f32 %v767_v53, %v1865_v50  ;;  %995 = vmatprep.mubr.f32.mxu0 %v853_v47 }
 0x1f9   : > { %996 = vmatmul.mubr.f32.gmra.mrb[36].mxu0 %v852_v49  ;;  %v854_v0 = vmax.f32 %v766_v52, 0.0 }
 0x1fa   : > { %v855_v55 = vmax.f32 %v768_v54, 0.0  ;;  %v771_v56 = vpop.f32.mrb[10].mxu1 }
 0x1fb   : > { %v772_v57 = vadd.f32 %v771_v56, %v1861_v28  ;;  %v773_v58 = vpop.f32.mrb[11].mxu1 }
 0x1fc   : > { %v774_v60 = vadd.f32 %v773_v58, %v1865_v50  ;;  %1000 = vmatprep.mubr.f32.mxu0 %v855_v55 }
 0x1fd   : > { %1001 = vmatmul.mubr.f32.gmra.mrb[38].mxu0 %v854_v0  ;;  %v856_v63 = vmax.f32 %v772_v57, 0.0 }
 0x1fe   : > { %v857_v61 = vmax.f32 %v774_v60, 0.0  ;;  %v777_v62 = vpop.f32.mrb[12].mxu1 }
 0x1ff   : > { %v778_v1 = vadd.f32 %v777_v62, %v1861_v28  ;;  %v779_v59 = vpop.f32.mrb[13].mxu1 }
 0x200   : > { %v780_v2 = vadd.f32 %v779_v59, %v1865_v50  ;;  %1005 = vmatprep.mubr.f32.mxu0 %v857_v61 }
 0x201   : > { %1006 = vmatmul.mubr.f32.gmra.mrb[40].mxu0 %v856_v63  ;;  %v858_v5 = vmax.f32 %v778_v1, 0.0 }
 0x202   : > { %v859_v3 = vmax.f32 %v780_v2, 0.0  ;;  %v783_v4 = vpop.f32.mrb[14].mxu1 }
 0x203   : > { %v784_v6 = vadd.f32 %v783_v4, %v1861_v28  ;;  %v785_v7 = vpop.f32.mrb[15].mxu1 }
 0x204   : > { %v786_v8 = vadd.f32 %v785_v7, %v1865_v50  ;;  %1010 = vmatprep.mubr.f32.mxu0 %v859_v3 }
 0x205   : > { %1011 = vmatmul.mubr.f32.gmra.mrb[42].mxu0 %v858_v5  ;;  %v860_v11 = vmax.f32 %v784_v6, 0.0 }
 0x206   : > { %v861_v9 = vmax.f32 %v786_v8, 0.0  ;;  %v789_v10 = vpop.f32.mrb[16].mxu1 }
 0x207   : > { %v790_v12 = vadd.f32 %v789_v10, %v1861_v28  ;;  %v791_v13 = vpop.f32.mrb[17].mxu1 }
 0x208   : > { %v792_v14 = vadd.f32 %v791_v13, %v1865_v50  ;;  %1015 = vmatprep.mubr.f32.mxu0 %v861_v9  ;;  %v1907_v9 = vld [vmem:[%s2014_s6] ss:$0 sm:$0xff] }
 0x209   : > { %1016 = vmatmul.mubr.f32.gmra.mrb[44].mxu0 %v860_v11  ;;  %v862_v17 = vmax.f32 %v790_v12, 0.0 }
 0x20a   : > { %v863_v15 = vmax.f32 %v792_v14, 0.0  ;;  %v795_v16 = vpop.f32.mrb[18].mxu1 }
 0x20b   : > { %v796_v18 = vadd.f32 %v795_v16, %v1861_v28  ;;  %v797_v19 = vpop.f32.mrb[19].mxu1 }
 0x20c   : > { %v798_v20 = vadd.f32 %v797_v19, %v1865_v50  ;;  %1020 = vmatprep.mubr.f32.mxu0 %v863_v15 }
 0x20d   : > { %1021 = vmatmul.mubr.f32.gmra.mrb[46].mxu0 %v862_v17  ;;  %v864_v23 = vmax.f32 %v796_v18, 0.0 }
 0x20e   : > { %v865_v21 = vmax.f32 %v798_v20, 0.0  ;;  %v801_v22 = vpop.f32.mrb[20].mxu1 }
 0x20f   : > { %v802_v24 = vadd.f32 %v801_v22, %v1861_v28  ;;  %v803_v25 = vpop.f32.mrb[21].mxu1 }
 0x210   : > { %v804_v26 = vadd.f32 %v803_v25, %v1865_v50  ;;  %1025 = vmatprep.mubr.f32.mxu0 %v865_v21 }
 0x211   : > { %1026 = vmatmul.mubr.f32.gmra.mrb[48].mxu0 %v864_v23  ;;  %v866_v44 = vmax.f32 %v802_v24, 0.0 }
 0x212   : > { %v867_v51 = vmax.f32 %v804_v26, 0.0  ;;  %v807_v43 = vpop.f32.mrb[22].mxu1 }
 0x213   : > { %v808_v27 = vadd.f32 %v807_v43, %v1861_v28  ;;  %v809_v29 = vpop.f32.mrb[23].mxu1 }
 0x214   : > { %v810_v30 = vadd.f32 %v809_v29, %v1865_v50  ;;  %1030 = vmatprep.mubr.f32.mxu0 %v867_v51 }
 0x215   : > { %1031 = vmatmul.mubr.f32.gmra.mrb[50].mxu0 %v866_v44  ;;  %v868_v34 = vmax.f32 %v808_v27, 0.0 }
 0x216   : > { %v869_v31 = vmax.f32 %v810_v30, 0.0  ;;  %v813_v32 = vpop.f32.mrb[24].mxu1 }
 0x217   : > { %v814_v35 = vadd.f32 %v813_v32, %v1861_v28  ;;  %v815_v36 = vpop.f32.mrb[25].mxu1 }
 0x218   : > { %v816_v38 = vadd.f32 %v815_v36, %v1865_v50  ;;  %1035 = vmatprep.mubr.f32.mxu0 %v869_v31 }
 0x219   : > { %1036 = vmatmul.mubr.f32.gmra.mrb[52].mxu0 %v868_v34  ;;  %v870_v37 = vmax.f32 %v814_v35, 0.0 }
 0x21a   : > { %v871_v40 = vmax.f32 %v816_v38, 0.0  ;;  %v819_v41 = vpop.f32.mrb[26].mxu1 }
 0x21b   : > { %v820_v33 = vadd.f32 %v819_v41, %v1861_v28  ;;  %v821_v39 = vpop.f32.mrb[27].mxu1 }
 0x21c   : > { %v822_v42 = vadd.f32 %v821_v39, %v1865_v50  ;;  %1040 = vmatprep.mubr.f32.mxu0 %v871_v40 }
 0x21d   : > { %1041 = vmatmul.mubr.f32.gmra.mrb[54].mxu0 %v870_v37  ;;  %v872_v47 = vmax.f32 %v820_v33, 0.0 }
 0x21e   : > { %v873_v45 = vmax.f32 %v822_v42, 0.0  ;;  %v825_v46 = vpop.f32.mrb[28].mxu1 }
 0x21f   : > { %v826_v48 = vadd.f32 %v825_v46, %v1861_v28  ;;  %v827_v49 = vpop.f32.mrb[29].mxu1 }
 0x220   : > { %v828_v52 = vadd.f32 %v827_v49, %v1865_v50  ;;  %1045 = vmatprep.mubr.f32.mxu0 %v873_v45 }
 0x221   : > { %1046 = vmatmul.mubr.f32.gmra.mrb[56].mxu0 %v872_v47  ;;  %v874_v55 = vmax.f32 %v826_v48, 0.0 }
 0x222   : > { %v875_v53 = vmax.f32 %v828_v52, 0.0  ;;  %v831_v54 = vpop.f32.mrb[30].mxu1 }
 0x223   : > { %v832_v56 = vadd.f32 %v831_v54, %v1861_v28  ;;  %v833_v0 = vpop.f32.mrb[31].mxu1 }
 0x224   : > { %v834_v57 = vadd.f32 %v833_v0, %v1865_v50  ;;  %1050 = vmatprep.mubr.f32.mxu0 %v875_v53 }
 0x225   : > { %1051 = vmatmul.mubr.f32.gmra.mrb[58].mxu0 %v874_v55  ;;  %v876_v61 = vmax.f32 %v832_v56, 0.0 }
 0x226   : > { %v877_v58 = vmax.f32 %v834_v57, 0.0  ;;  %v837_v60 = vpop.f32.mrb[32].mxu1 }
 0x227   : > { %v838_v62 = vadd.f32 %v837_v60, %v1861_v28  ;;  %v839_v63 = vpop.f32.mrb[33].mxu1 }
 0x228   : > { %v840_v1 = vadd.f32 %v839_v63, %v1865_v50  ;;  %1055 = vmatprep.mubr.f32.mxu0 %v877_v58 }
 0x229   : > { %1056 = vmatmul.mubr.f32.gmra.mrb[60].mxu0 %v876_v61  ;;  %v878_v3 = vmax.f32 %v838_v62, 0.0 }
 0x22a   : > { %v879_v59 = vmax.f32 %v840_v1, 0.0  ;;  %v843_v2 = vpop.f32.mrb[34].mxu1 }
 0x22b   : > { %v844_v4 = vadd.f32 %v843_v2, %v1861_v28  ;;  %v845_v5 = vpop.f32.mrb[35].mxu1 }
 0x22c   : > { %v846_v6 = vadd.f32 %v845_v5, %v1865_v50  ;;  %1060 = vmatprep.mubr.f32.mxu0 %v879_v59 }
 0x22d   : > { %1061 = vmatmul.mubr.f32.gmra.mrb[62].mxu0 %v878_v3  ;;  %v880_v8 = vmax.f32 %v844_v4, 0.0 }
 0x22e   : > { %v881_v7 = vmax.f32 %v846_v6, 0.0 }
 0x230   : > { %1065 = vmatprep.mubr.f32.mxu0 %v881_v7 }
 0x231   : > { %1066 = vmatmul.mubr.f32.gmra.mrb[64].mxu0 %v880_v8 }
 0x2c4   : > { %v987_v10 = vpop.f32.mrb[32].mxu0 }
 0x2c5   : > { %v988_v28 = vadd.f32 %v1907_v9, %v987_v10  ;;  %v989_v11 = vpop.f32.mrb[33].mxu0 }
 0x2c7   : > { %1071 = vst [vmem:[%s1910_s23] sm:$0xff] %v988_v28 }
 0x2c8   : > { %v992_v50 = vpop.f32.mrb[34].mxu0 }
 0x2c9   : > { %v993_v12 = vadd.f32 %v1907_v9, %v992_v50  ;;  %v994_v13 = vpop.f32.mrb[35].mxu0 }
 0x2cb   : > { %1072 = vst [vmem:[%s1910_s23 + $0x8] sm:$0xff] %v993_v12 }
 0x2cc   : > { %v997_v14 = vpop.f32.mrb[36].mxu0 }
 0x2cd   : > { %v998_v15 = vadd.f32 %v1907_v9, %v997_v14  ;;  %v999_v16 = vpop.f32.mrb[37].mxu0 }
 0x2cf   : > { %1073 = vst [vmem:[%s1910_s23 + $0x10] sm:$0xff] %v998_v15 }
 0x2d0   : > { %v1002_v17 = vpop.f32.mrb[38].mxu0 }
 0x2d1   : > { %v1003_v18 = vadd.f32 %v1907_v9, %v1002_v17  ;;  %v1004_v19 = vpop.f32.mrb[39].mxu0 }
 0x2d3   : > { %1074 = vst [vmem:[%s1910_s23 + $0x18] sm:$0xff] %v1003_v18 }
 0x2d4   : > { %v1007_v20 = vpop.f32.mrb[40].mxu0 }
 0x2d5   : > { %v1008_v21 = vadd.f32 %v1907_v9, %v1007_v20  ;;  %v1009_v22 = vpop.f32.mrb[41].mxu0 }
 0x2d7   : > { %1075 = vst [vmem:[%s1910_s23 + $0x20] sm:$0xff] %v1008_v21 }
 0x2d8   : > { %v1012_v23 = vpop.f32.mrb[42].mxu0 }
 0x2d9   : > { %v1013_v24 = vadd.f32 %v1907_v9, %v1012_v23  ;;  %v1014_v25 = vpop.f32.mrb[43].mxu0 }
 0x2db   : > { %1076 = vst [vmem:[%s1910_s23 + $0x28] sm:$0xff] %v1013_v24 }
 0x2dc   : > { %v1017_v26 = vpop.f32.mrb[44].mxu0 }
 0x2dd   : > { %v1018_v51 = vadd.f32 %v1907_v9, %v1017_v26  ;;  %v1019_v43 = vpop.f32.mrb[45].mxu0 }
 0x2df   : > { %1077 = vst [vmem:[%s1910_s23 + $0x30] sm:$0xff] %v1018_v51 }
 0x2e0   : > { %v1022_v44 = vpop.f32.mrb[46].mxu0 }
 0x2e1   : > { %v1023_v27 = vadd.f32 %v1907_v9, %v1022_v44  ;;  %v1024_v29 = vpop.f32.mrb[47].mxu0 }
 0x2e3   : > { %1078 = vst [vmem:[%s1910_s23 + $0x38] sm:$0xff] %v1023_v27 }
 0x2e4   : > { %v1027_v30 = vpop.f32.mrb[48].mxu0 }
 0x2e5   : > { %v1028_v31 = vadd.f32 %v1907_v9, %v1027_v30  ;;  %v1029_v32 = vpop.f32.mrb[49].mxu0 }
 0x2e7   : > { %1079 = vst [vmem:[%s1910_s23 + $0x40] sm:$0xff] %v1028_v31 }
 0x2e8   : > { %v1032_v34 = vpop.f32.mrb[50].mxu0 }
 0x2e9   : > { %v1033_v35 = vadd.f32 %v1907_v9, %v1032_v34  ;;  %v1034_v36 = vpop.f32.mrb[51].mxu0 }
 0x2eb   : > { %1080 = vst [vmem:[%s1910_s23 + $0x48] sm:$0xff] %v1033_v35 }
 0x2ec   : > { %v1037_v38 = vpop.f32.mrb[52].mxu0 }
 0x2ed   : > { %v1038_v40 = vadd.f32 %v1907_v9, %v1037_v38  ;;  %v1039_v41 = vpop.f32.mrb[53].mxu0 }
 0x2ef   : > { %1081 = vst [vmem:[%s1910_s23 + $0x50] sm:$0xff] %v1038_v40 }
 0x2f0   : > { %v1042_v37 = vpop.f32.mrb[54].mxu0 }
 0x2f1   : > { %v1043_v33 = vadd.f32 %v1907_v9, %v1042_v37  ;;  %v1044_v39 = vpop.f32.mrb[55].mxu0 }
 0x2f3   : > { %1082 = vst [vmem:[%s1910_s23 + $0x58] sm:$0xff] %v1043_v33 }
 0x2f4   : > { %v1047_v42 = vpop.f32.mrb[56].mxu0 }
 0x2f5   : > { %v1048_v45 = vadd.f32 %v1907_v9, %v1047_v42  ;;  %v1049_v46 = vpop.f32.mrb[57].mxu0 }
 0x2f7   : > { %1083 = vst [vmem:[%s1910_s23 + $0x60] sm:$0xff] %v1048_v45 }
 0x2f8   : > { %v1052_v47 = vpop.f32.mrb[58].mxu0 }
 0x2f9   : > { %v1053_v48 = vadd.f32 %v1907_v9, %v1052_v47  ;;  %v1054_v49 = vpop.f32.mrb[59].mxu0 }
 0x2fb   : > { %1084 = vst [vmem:[%s1910_s23 + $0x68] sm:$0xff] %v1053_v48 }
 0x2fc   : > { %v1057_v52 = vpop.f32.mrb[60].mxu0 }
 0x2fd   : > { %v1058_v53 = vadd.f32 %v1907_v9, %v1057_v52  ;;  %v1059_v54 = vpop.f32.mrb[61].mxu0 }
 0x2ff   : > { %1085 = vst [vmem:[%s1910_s23 + $0x70] sm:$0xff] %v1058_v53 }
 0x300   : > { %v1062_v55 = vpop.f32.mrb[62].mxu0 }
 0x301   : > { %v1063_v56 = vadd.f32 %v1907_v9, %v1062_v55  ;;  %v1064_v0 = vpop.f32.mrb[63].mxu0  ;;  %1095 = sbr.rel (!%p2025_p6) target bundleno = 804 (0x324), region = 56 }
 0x303   : > { %1086 = vst [vmem:[%s1910_s23 + $0x78] sm:$0xff] %v1063_v56 }
 0x304   : > { %v1067_v57 = vpop.f32.mrb[64].mxu0 }
 0x305   : > { %v1068_v58 = vadd.f32 %v1907_v9, %v1067_v57  ;;  %v1069_v60 = vpop.f32.mrb[65].mxu0 }
 0x307   : > { %1087 = vst [vmem:[%s1910_s23 + $0x80] sm:$0xff] %v1068_v58 }
 0x308   : > { %s2032_s8 = smov (!%p1098_p9, %s1097_s8), 17 }
 0x309   : > { %s1952_s9 = sshll.u32 %s2032_s8, 7 }
 0x30a   : > { %s1102_s14 = ssub.s32 2176, %s1952_s9 }
 0x30b   : > { %1103 = vsyncadd %s1947_s29, %s1102_s14  ;;  %p1208_p10 = scmp.ne.s32.totalorder %s1952_s9, 0  ;;  %s1214_s17 = smul.u32 2176, %s1554_s28 }
 0x30c   : > { %s1108_s15 = sshll.u32 %s1910_s23, 4  ;;  %s1490_s19 = smov [#allocation5]   ;;  %s1964_s15 = int_to_ptr.vmem [resolvable:$true] %s1108_s15 }
 0x30d   : > { %s1962_s16 = scalar_lea.hbm %s2015_s7, %s1214_s17  ;;  %s1417_s18 = scalar_lea.vmem %s1964_s15, %s1952_s9 }
 0x30e   : > { %p1418_p12 = scmp.ne.s32.totalorder %s1964_s15, %s1417_s18  ;;  %s1421_s20 = sshll.u32 %s1490_s19, 4  ;;  %s1422_s20 = int_to_ptr.vmem [resolvable:$false] %s1421_s20 }
 0x30f   : > { %s1423_s28 = scalar_lea.vmem %s1422_s20, 4352  ;;  %p1424_p4 = scmp.lt.s32.totalorder %s1964_s15, %s1422_s20 }
 0x310   : > { %p1419_p2 = pnand %p1418_p12, %p1208_p10  ;;  %p1425_p7 = scmp.lt.s32.totalorder %s1423_s28, %s1417_s18 }
 0x312   : > { %p1420_p3 = pneg %p1419_p2  ;;  %p1426_p8 = por %p1425_p7, %p1424_p4 }
 0x314   : > { %p1427_p11 = pnand %p1426_p8, %p1420_p3 }
 0x316   : > { %1430 = shalt.err (!%p1427_p11)
}
 0x317   : > { %s1431_s21 = scalar_lea.hbm %s1962_s16, %s1952_s9  ;;  %s1435_s8 = scalar_lea.hbm %s2015_s7, 4224 }
 0x318   : > { %p1432_p13 = scmp.ne.s32.totalorder %s1962_s16, %s1431_s21  ;;  %p1436_p5 = scmp.lt.u32.totalorder %s1962_s16, %s2015_s7 }
 0x319   : > { %p1437_p6 = scmp.lt.u32.totalorder %s1435_s8, %s1431_s21  ;;  %p1439_p12 = scmp.lt.u32.totalorder %s1431_s21, %s1962_s16 }
 0x31a   : > { %p1433_p1 = pnand %p1432_p13, %p1208_p10 }
 0x31b   : > { %p1438_p9 = por %p1437_p6, %p1436_p5 }
 0x31c   : > { %p1434_p0 = pneg %p1433_p1 }
 0x31d   : > { %p1440_p2 = por %p1439_p12, %p1438_p9 }
 0x31f   : > { %p1441_p3 = pnand %p1440_p2, %p1434_p0 }
 0x321   : > { %1444 = shalt.err (!%p1441_p3)
}
 0x322   : > { %s1491_s11 = smov 128   ;;  %s1492_s13 = smov 8  }
 0x323   : > { %1114 = dma.vmem_to_hbm [thread:$0]  (%p1208_p10), %s1964_s15, %s1952_s9, %s1962_s16, %s1947_s29, %s1491_s11, %s1491_s11, %s1492_s13  }
 0x324 PF: > { %p1349_p4 = scmp.ge.s32.totalorder %s1483_s27, 2  ;;  %s1123_s18 = sand.u32 1, %s1471_s24  }
 0x325   : > { %p2026_p7 = scmp.ne.s32.totalorder %s2019_s12, 0  ;;  %s1124_s19 = scalar_lea.sflag [#allocation4], %s1123_s18 }
 0x327   : > { %p1344_p8 = pnand %p1349_p4, %p2026_p7 }
 0x329   : > { %1466 = dma.done.wait (!%p1344_p8), %s1124_s19, 2176  }
 0x32a   : > { %1468 = vsyncadd (!%p1344_p8), %s1124_s19, 4294965120  ;;  %p18_p11 = scmp.ge.s32.totalorder %s1558_s30, 4   ;;  %s2027_s24 = smov %s1475_s25 }
 0x32b   : > { %s2028_s25 = smov %s1479_s26  ;;  %s2029_s26 = smov %s1569_s10 }
 0x32c   : > { %s2030_s27 = smov %s1558_s30  ;;  %20 = sbr.rel (!%p18_p11) target bundleno = 4 (0x4), region = 88 }
 0x333   :  { %1129 = vsyncpa [#allocation3], 1 }
 0x334   :  { %1131 = vsyncpa [#allocation3 + $0x1], 1 }
 0x335   :  { %1132 = vsyncpa [#allocation4], 1 }
 0x336   :  { %1134 = vsyncpa [#allocation4 + $0x1], 1 }

</bundles_post_ra>
